<compile_context>
chip_gen: v6e
topology: v6e:2x2x1
jax: 0.10.0
libtpu: 0.0.40
codegen_flags: <defaults>
</compile_context>

<pallas_src>
import functools

import jax
import jax.numpy as jnp
from jax.experimental import pallas as pl
from jax.experimental.pallas import tpu as pltpu


def _head_kernel(x_ref, w1_ref, b1_ref, w2_ref, b2_ref, o_ref):
    # x:  [Bp, H]  bf16 (resident)     w1: [H, tk]  bf16     b1: [1, tk]  f32
    # w2: [tk, Lp] bf16                b2: [1, Lp]  f32 (resident)
    # o:  [Bp, Lp] f32  (resident across the reduction axis -> accumulate in place)
    k = pl.program_id(0)

    @pl.when(k == 0)
    def _init():
        # Fold the out_proj bias into the (resident) output block once.
        o_ref[...] = jnp.broadcast_to(b2_ref[...], o_ref.shape)

    # dense tile + bias -> relu  (dropout is identity at inference)
    h = jnp.dot(x_ref[...], w1_ref[...], preferred_element_type=jnp.float32)
    h = jnp.maximum(h + b1_ref[...], 0.0)

    # Partial out_proj contribution of this tile of the 2048-wide inner dim.
    o_ref[...] += jnp.dot(
        h.astype(jnp.bfloat16), w2_ref[...], preferred_element_type=jnp.float32
    )


def _round_up(x, m):
    return (x + m - 1) // m * m


def _default_tk(inner):
    """Generation-aware inner-dim tile: 2048 on v7x (3.2 TB/s HBM, fully
    contiguous w1 tiles), 1024 elsewhere (safe within v5e's 16 MiB scoped VMEM)."""
    try:
        kind = jax.devices()[0].device_kind.lower()
    except Exception:  # pragma: no cover - defensive
        kind = ""
    if "v7" in kind or "7x" in kind:
        return min(inner, 2048)
    return min(inner, 1024)


def prepare_head_params(w1, b1, w2, b2):
    """One-time (model-load) conversion: bf16 weights, lane-dense padded out_proj.

    Keeping this out of the jitted per-inference path is the single biggest
    performance fix — the kernel is weight-DMA bound and a per-call f32->bf16
    cast would ~triple HBM traffic on the dominant stream.
    """
    inner = w1.shape[1]
    num_labels = w2.shape[1]
    Lp = _round_up(max(num_labels, 128), 128)  # lane-dense output width

    params = dict(
        w1=jnp.asarray(w1, jnp.bfloat16),
        b1=jnp.asarray(b1, jnp.float32).reshape(1, inner),
        w2=jnp.pad(jnp.asarray(w2, jnp.float32),
                   ((0, 0), (0, Lp - num_labels))).astype(jnp.bfloat16),
        b2=jnp.pad(jnp.asarray(b2, jnp.float32),
                   (0, Lp - num_labels)).reshape(1, Lp),
    )
    params = jax.tree_util.tree_map(jax.block_until_ready, params)
    return params, num_labels


@functools.partial(jax.jit, static_argnames=("num_labels", "tk"))
def roberta_classification_head(features, w1_b, b1_2d, w2_b, b2_2d,
                                *, num_labels, tk):
    """features: [B, S, H] (any float dtype). Params must come from
    prepare_head_params().  Returns [B, num_labels] float32 logits."""
    B, S, H = features.shape
    inner = w1_b.shape[1]
    Lp = w2_b.shape[1]
    if inner % tk != 0:
        tk = inner  # module hard-codes inner=2048; fall back to a single tile

    Bp = _round_up(max(B, 8), 8)  # sublane-aligned batch; kernel is DMA-bound,
                                  # so do NOT pad further for MXU utilization.

    # CLS token + bf16 cast + batch pad: tiny, fuses into one XLA op per call.
    # TODO(synk): fusing the CLS slice into the kernel via a 1-wide S block is
    # intentionally skipped to stay within the (8,128) BlockSpec constraint.
    x = features[:, 0, :].astype(jnp.bfloat16)
    x = jnp.pad(x, ((0, Bp - B), (0, 0)))

    cost = pl.CostEstimate(
        flops=2 * Bp * H * inner + 2 * Bp * inner * Lp,
        transcendentals=0,
        bytes_accessed=(x.size * 2 + w1_b.size * 2 + w2_b.size * 2
                        + b1_2d.size * 4 + b2_2d.size * 4 + Bp * Lp * 4),
    )

    out = pl.pallas_call(
        _head_kernel,
        out_shape=jax.ShapeDtypeStruct((Bp, Lp), jnp.float32),
        grid_spec=pltpu.PrefetchScalarGridSpec(
            num_scalar_prefetch=0,
            grid=(inner // tk,),                           # inner-dim reduction
            in_specs=[
                pl.BlockSpec((Bp, H), lambda k: (0, 0)),   # x   (resident)
                pl.BlockSpec((H, tk), lambda k: (0, k)),   # w1 tile
                pl.BlockSpec((1, tk), lambda k: (0, k)),   # b1 tile
                pl.BlockSpec((tk, Lp), lambda k: (k, 0)),  # w2 tile
                pl.BlockSpec((1, Lp), lambda k: (0, 0)),   # b2  (resident)
            ],
            # Same block index for every k -> output block is resident across
            # the reduction axis; the kernel accumulates directly into it.
            out_specs=pl.BlockSpec((Bp, Lp), lambda k: (0, 0)),
        ),
        compiler_params=pltpu.CompilerParams(
            dimension_semantics=("arbitrary",),  # reduction axis
        ),
        cost_estimate=cost,
    )(x, w1_b, b1_2d, w2_b, b2_2d)

    return out[:B, :num_labels]


if __name__ == "__main__":
    # Small, deterministic config: hidden_size=32, seq=8, batch=2, num_labels=4
    B, S, H = 2, 8, 32
    INNER = 2048
    NUM_LABELS = 4

    key = jax.random.PRNGKey(0)
    k_feat, k_w1, k_b1, k_w2, k_b2 = jax.random.split(key, 5)

    features = jax.random.normal(k_feat, (B, S, H), dtype=jnp.float32)
    # Deterministic synthetic "Linear" parameters (not a checkpoint).
    w1 = jax.random.normal(k_w1, (H, INNER), dtype=jnp.float32) * 0.02
    b1 = jax.random.normal(k_b1, (INNER,), dtype=jnp.float32) * 0.02
    w2 = jax.random.normal(k_w2, (INNER, NUM_LABELS), dtype=jnp.float32) * 0.02
    b2 = jax.random.normal(k_b2, (NUM_LABELS,), dtype=jnp.float32) * 0.02

    # One-time (load-time) parameter preparation — outside the inference path.
    params, num_labels = prepare_head_params(w1, b1, w2, b2)
    tk = _default_tk(INNER)

    out = roberta_classification_head(
        features, params["w1"], params["b1"], params["w2"], params["b2"],
        num_labels=num_labels, tk=tk)
    out = jax.block_until_ready(out)

    # f32 reference (dropout = identity at inference).  The kernel uses bf16
    # weights/activations with f32 accumulation, so compare with a tolerance
    # matched to bf16 rounding.
    x_cls = features[:, 0, :]
    ref = jnp.maximum(x_cls @ w1 + b1, 0.0) @ w2 + b2
    assert out.shape == (B, NUM_LABELS)
    assert jnp.allclose(out, ref, atol=3e-2, rtol=3e-2), float(
        jnp.max(jnp.abs(out - ref))
    )

    print("KERNEL_OK")
</pallas_src>

<mosaic_0001>
module attributes {stable_mosaic.version = 11 : i64} {
  func.func @_head_kernel(%arg0: i32, %arg1: memref<8x32xbf16, #tpu.memory_space<vmem>>, %arg2: memref<32x1024xbf16, #tpu.memory_space<vmem>>, %arg3: memref<1x1024xf32, #tpu.memory_space<vmem>>, %arg4: memref<1024x128xbf16, #tpu.memory_space<vmem>>, %arg5: memref<1x128xf32, #tpu.memory_space<vmem>>, %arg6: memref<8x128xf32, #tpu.memory_space<vmem>>) attributes {dimension_semantics = [#tpu.dimension_semantics<arbitrary>], iteration_bounds = array<i64: 2>, scalar_prefetch = 0 : i64, scratch_operands = 0 : i64, tpu.core_type = #tpu.core_type<tc>, window_params = [{pipeline_mode = #tpu.pipeline_mode<synchronous>, transform_indices = @transform_0, window_bounds = array<i64: 8, 32>}, {transform_indices = @transform_1, window_bounds = array<i64: 32, 1024>}, {transform_indices = @transform_2, window_bounds = array<i64: 1, 1024>}, {transform_indices = @transform_3, window_bounds = array<i64: 1024, 128>}, {pipeline_mode = #tpu.pipeline_mode<synchronous>, transform_indices = @transform_4, window_bounds = array<i64: 1, 128>}, {pipeline_mode = #tpu.pipeline_mode<synchronous>, transform_indices = @transform_5, window_bounds = array<i64: 8, 128>}]} {
    %c0_i32 = arith.constant 0 : i32
    %0 = arith.cmpi eq, %arg0, %c0_i32 : i32
    %1 = arith.extui %0 : i1 to i32
    %c0_i32_0 = arith.constant 0 : i32
    %2 = arith.cmpi ne, %1, %c0_i32_0 : i32
    scf.if %2 {
      %c0_14 = arith.constant 0 : index
      %c0_15 = arith.constant 0 : index
      %17 = vector.load %arg5[%c0_14, %c0_15] : memref<1x128xf32, #tpu.memory_space<vmem>>, vector<1x128xf32>
      %18 = vector.shape_cast %17 : vector<1x128xf32> to vector<1x128xf32>
      %19 = vector.broadcast %18 : vector<1x128xf32> to vector<8x128xf32>
      %c0_16 = arith.constant 0 : index
      %c0_17 = arith.constant 0 : index
      %20 = vector.load %arg6[%c0_16, %c0_17] : memref<8x128xf32, #tpu.memory_space<vmem>>, vector<8x128xf32>
      tpu.vector_store %arg6[%c0_16, %c0_17], %19 {strides = array<i32>} : memref<8x128xf32, #tpu.memory_space<vmem>>, vector<8x128xf32>,
    } else {
    }
    %c0 = arith.constant 0 : index
    %c0_1 = arith.constant 0 : index
    %3 = vector.load %arg1[%c0, %c0_1] : memref<8x32xbf16, #tpu.memory_space<vmem>>, vector<8x32xbf16>
    %c0_2 = arith.constant 0 : index
    %c0_3 = arith.constant 0 : index
    %4 = vector.load %arg2[%c0_2, %c0_3] : memref<32x1024xbf16, #tpu.memory_space<vmem>>, vector<32x1024xbf16>
    %cst = arith.constant dense<0.000000e+00> : vector<8x1024xf32>
    %5 = tpu.matmul %3, %4, %cst {dimension_numbers = #tpu.dot_dimension_numbers<[1], [0], [0], [1], [0, 0, 1, 1], [], []>} : vector<8x32xbf16>, vector<32x1024xbf16>, vector<8x1024xf32> -> vector<8x1024xf32>
    %c0_4 = arith.constant 0 : index
    %c0_5 = arith.constant 0 : index
    %6 = vector.load %arg3[%c0_4, %c0_5] : memref<1x1024xf32, #tpu.memory_space<vmem>>, vector<1x1024xf32>
    %7 = vector.broadcast %6 : vector<1x1024xf32> to vector<8x1024xf32>
    %8 = arith.addf %5, %7 : vector<8x1024xf32>
    %cst_6 = arith.constant 0.000000e+00 : f32
    %9 = vector.broadcast %cst_6 : f32 to vector<8x1024xf32>
    %10 = arith.maximumf %8, %9 : vector<8x1024xf32>
    %c0_7 = arith.constant 0 : index
    %c0_8 = arith.constant 0 : index
    %11 = vector.load %arg6[%c0_7, %c0_8] : memref<8x128xf32, #tpu.memory_space<vmem>>, vector<8x128xf32>
    %12 = arith.truncf %10 : vector<8x1024xf32> to vector<8x1024xbf16>
    %c0_9 = arith.constant 0 : index
    %c0_10 = arith.constant 0 : index
    %13 = vector.load %arg4[%c0_9, %c0_10] : memref<1024x128xbf16, #tpu.memory_space<vmem>>, vector<1024x128xbf16>
    %cst_11 = arith.constant dense<0.000000e+00> : vector<8x128xf32>
    %14 = tpu.matmul %12, %13, %cst_11 {dimension_numbers = #tpu.dot_dimension_numbers<[1], [0], [0], [1], [0, 0, 1, 1], [], []>} : vector<8x1024xbf16>, vector<1024x128xbf16>, vector<8x128xf32> -> vector<8x128xf32>
    %15 = arith.addf %11, %14 : vector<8x128xf32>
    %c0_12 = arith.constant 0 : index
    %c0_13 = arith.constant 0 : index
    %16 = vector.load %arg6[%c0_12, %c0_13] : memref<8x128xf32, #tpu.memory_space<vmem>>, vector<8x128xf32>
    tpu.vector_store %arg6[%c0_12, %c0_13], %15 {strides = array<i32>} : memref<8x128xf32, #tpu.memory_space<vmem>>, vector<8x128xf32>,
    return
  }
  func.func @transform_0(%arg0: i32) -> (i32, i32) {
    %c0_i32 = arith.constant 0 : i32
    %c0_i32_0 = arith.constant 0 : i32
    %c0_i32_1 = arith.constant 0 : i32
    return %c0_i32, %c0_i32_0 : i32, i32
  }
  func.func @transform_1(%arg0: i32) -> (i32, i32) {
    %c0_i32 = arith.constant 0 : i32
    %c0_i32_0 = arith.constant 0 : i32
    return %c0_i32, %arg0 : i32, i32
  }
  func.func @transform_2(%arg0: i32) -> (i32, i32) {
    %c0_i32 = arith.constant 0 : i32
    %c0_i32_0 = arith.constant 0 : i32
    return %c0_i32, %arg0 : i32, i32
  }
  func.func @transform_3(%arg0: i32) -> (i32, i32) {
    %c0_i32 = arith.constant 0 : i32
    %c0_i32_0 = arith.constant 0 : i32
    return %arg0, %c0_i32 : i32, i32
  }
  func.func @transform_4(%arg0: i32) -> (i32, i32) {
    %c0_i32 = arith.constant 0 : i32
    %c0_i32_0 = arith.constant 0 : i32
    %c0_i32_1 = arith.constant 0 : i32
    return %c0_i32, %c0_i32_0 : i32, i32
  }
  func.func @transform_5(%arg0: i32) -> (i32, i32) {
    %c0_i32 = arith.constant 0 : i32
    %c0_i32_0 = arith.constant 0 : i32
    %c0_i32_1 = arith.constant 0 : i32
    return %c0_i32, %c0_i32_0 : i32, i32
  }
}

</mosaic_0001>

<bundles_post_ra>
// kernel: roberta_classification_head.1
= control target key start
LH: loop header
LB: loop body
LE: loop exit
PB: predicated region body
PF: predicated region fallthrough
CT: control target
= control target key end

     0   :  { %10 = vsyncpa [#allocation3], 0  ;;  %s2098_s0 = inlined_call_operand.vmem [shape: bf16[8,32], index: 0, kind: input, shape index: {}]   ;;  %s2099_s1 = inlined_call_operand.hbm [shape: bf16[32,2048], index: 1, kind: input, shape index: {}]   ;;  %s2100_s2 = inlined_call_operand.vmem [shape: f32[1,2048], index: 2, kind: input, shape index: {}]   ;;  %s2101_s3 = inlined_call_operand.hbm [shape: bf16[2048,128], index: 3, kind: input, shape index: {}]   ;;  %s2102_s4 = inlined_call_operand.vmem [shape: f32[1,128], index: 4, kind: input, shape index: {}]   ;;  %s2103_s5 = inlined_call_operand.vmem [shape: f32[8,128], index: 5, kind: output, shape index: {}]  }
   0x1   :  { %12 = vsyncpa [#allocation3 + $0x1], 0 }
   0x2   :  { %13 = vsyncpa [#allocation5], 0 }
   0x3   :  { %15 = vsyncpa [#allocation5 + $0x1], 0  ;;  %s1812_s18 = smov 0   ;;  %s1814_s19 = smov 0  }
   0x4   :  { %s1816_s20 = smov 0   ;;  %s1818_s21 = smov 0  }
   0x5 LB: > { %s1831_s22 = sadd.s32 4294967295, %s1772_s21   ;;  %s1834_s23 = sadd.s32 1, %s1772_s21   ;;  %s1772_s21 = sphi %s1818_s21, %s2112_s21   ;;  %s1768_s20 = sphi %s1816_s20, %s2111_s20   ;;  %s1764_s19 = sphi %s1814_s19, %s2110_s19   ;;  %s1760_s18 = sphi %s1812_s18, %s2109_s18  }
   0x6   : > { %s46_s24 = ssub.s32 %s1772_s21, %s1834_s23  ;;  %s49_s25 = sadd.s32 1, %s1768_s20 }
   0x7   : > { %p47_p0 = scmp.eq.s32.totalorder %s46_s24, 0  ;;  %p56_p1 = scmp.ne.s32.totalorder %s1768_s20, %s1764_s19 }
   0x8   : > { %p57_p2 = scmp.eq.s32.totalorder %s1772_s21, 0  ;;  %p62_p3 = scmp.ne.s32.totalorder %s1764_s19, %s1760_s18 }
   0x9   : > { %s1844_s26 = scalar_select %p47_p0, %s1768_s20, %s49_s25  }
   0xa   : > { %p58_p4 = por %p57_p2, %p56_p1  ;;  %p63_p5 = scmp.eq.s32.totalorder %s1831_s22, 0 }
   0xb   : > { %p1575_p6 = scmp.lt.s32.totalorder %s1772_s21, 2  ;;  %s1853_s28 = sand.u32 1, %s1768_s20  }
   0xc   : > { %p1848_p7 = por %p63_p5, %p62_p3  ;;  %s1376_s29 = sshll.u32 %s1853_s28, 7 }
   0xd   : > { %s1474_s30 = sshll.u32 %s1772_s21, 9  ;;  %s190_s9 = scalar_lea.vmem [#allocation2], %s1376_s29 }
   0xe   : > { %s2105_s27 = scalar_select %p1848_p7, 1, 0 }
   0xf   : > { %s1860_s8 = scalar_lea.hbm %s2099_s1, %s1474_s30  ;;  %s197_s10 = sshll.u32 %s190_s9, 4  ;;  %s1862_s10 = int_to_ptr.vmem [resolvable:$true] %s197_s10 }
  0x10   : > { %p1864_p8 = pnand %p1575_p6, %p58_p4  ;;  %s187_s12 = scalar_lea.sflag [#allocation3], %s1853_s28 }
  0x11   : > { %s1678_s13 = scalar_lea.hbm %s1860_s8, 2048  ;;  %s1683_s16 = scalar_lea.hbm %s2099_s1, 4096 }
  0x12   : > { %p1679_p9 = scmp.ne.s32.totalorder %s1860_s8, %s1678_s13  ;;  %p1680_p10 = pneg %p1864_p8 }
  0x13   : > { %p1684_p13 = scmp.lt.s32.totalorder %s1860_s8, %s2099_s1  ;;  %p1685_p0 = scmp.lt.s32.totalorder %s1683_s16, %s1678_s13 }
  0x14   : > { %p1681_p11 = pnand %p1680_p10, %p1679_p9 }
  0x15   : > { %p1686_p1 = por %p1685_p0, %p1684_p13 }
  0x16   : > { %p1682_p12 = pneg %p1681_p11 }
  0x18   : > { %p1687_p2 = pnand %p1686_p1, %p1682_p12 }
  0x1a   : > { %1690 = shalt.err (!%p1687_p2)
}
  0x1b   : > { %s1691_s24 = scalar_lea.vmem %s1862_s10, 2048  ;;  %s1774_s25 = smov [#allocation2]  }
  0x1c   : > { %p1692_p3 = scmp.ne.s32.totalorder %s1862_s10, %s1691_s24  ;;  %s1696_s29 = sshll.u32 %s1774_s25, 4  ;;  %s1697_s29 = int_to_ptr.vmem [resolvable:$false] %s1696_s29 }
  0x1d   : > { %s1698_s30 = scalar_lea.vmem %s1697_s29, 4096  ;;  %p1699_p6 = scmp.lt.s32.totalorder %s1862_s10, %s1697_s29 }
  0x1e   : > { %p1694_p4 = pnand %p1692_p3, %p1680_p10  ;;  %p1700_p9 = scmp.lt.s32.totalorder %s1698_s30, %s1691_s24 }
  0x20   : > { %p1695_p5 = pneg %p1694_p4  ;;  %p1701_p11 = por %p1700_p9, %p1699_p6 }
  0x22   : > { %p1702_p13 = pnand %p1701_p11, %p1695_p5 }
  0x24   : > { %1705 = shalt.err (!%p1702_p13)
}
  0x25   : > { %s1775_s6 = smov 1024   ;;  %s1776_s7 = smov 512  }
  0x26   : > { %s1777_s9 = smov 32   ;;  %p1382_p12 = scmp.ge.s32.totalorder %s1772_s21, 1 }
  0x27   : > { %1571 = dma.hbm_to_vmem [thread:$0]  (!%p1864_p8), %s1860_s8, 2048, %s1862_s10, %s187_s12, %s1775_s6, %s1776_s7, %s1777_s9  }
  0x28   : > { %p234_p0 = scmp.lt.s32.totalorder %s1772_s21, 3  ;;  %s1379_s13 = sshll.u32 %s1853_s28, 9 }
  0x29   : > { %s1475_s15 = sshll.u32 %s1772_s21, 13  ;;  %s219_s16 = scalar_lea.vmem [#allocation4], %s1379_s13 }
  0x2a   : > { %p1898_p1 = pnand %p1382_p12, %p234_p0  ;;  %s226_s17 = sshll.u32 %s219_s16, 4  ;;  %s1908_s17 = int_to_ptr.vmem [resolvable:$true] %s226_s17 }
  0x2b   : > { %s1906_s25 = scalar_lea.hbm %s2101_s3, %s1475_s15  ;;  %s216_s8 = scalar_lea.sflag [#allocation5], %s1853_s28 }
  0x2c   : > { %s1706_s10 = scalar_lea.hbm %s1906_s25, 8192  ;;  %s1711_s29 = scalar_lea.hbm %s2101_s3, 16384 }
  0x2d   : > { %p1707_p2 = scmp.ne.s32.totalorder %s1906_s25, %s1706_s10  ;;  %p1712_p5 = scmp.lt.s32.totalorder %s1906_s25, %s2101_s3 }
  0x2e   : > { %p1713_p6 = scmp.lt.s32.totalorder %s1711_s29, %s1706_s10 }
  0x2f   : > { %p1709_p3 = pnand %p1707_p2, %p1680_p10 }
  0x30   : > { %p1714_p9 = por %p1713_p6, %p1712_p5 }
  0x31   : > { %p1710_p4 = pneg %p1709_p3 }
  0x33   : > { %p1715_p11 = pnand %p1714_p9, %p1710_p4 }
  0x35   : > { %1718 = shalt.err (!%p1715_p11)
}
  0x36   : > { %s1719_s7 = scalar_lea.vmem %s1908_s17, 8192  ;;  %s1778_s9 = smov [#allocation4]  }
  0x37   : > { %p1720_p13 = scmp.ne.s32.totalorder %s1908_s17, %s1719_s7  ;;  %s1724_s13 = sshll.u32 %s1778_s9, 4  ;;  %s1725_s13 = int_to_ptr.vmem [resolvable:$false] %s1724_s13 }
  0x38   : > { %s1726_s15 = scalar_lea.vmem %s1725_s13, 16384  ;;  %p1727_p2 = scmp.lt.s32.totalorder %s1908_s17, %s1725_s13 }
  0x39   : > { %p1722_p12 = pnand %p1720_p13, %p1680_p10  ;;  %p1728_p3 = scmp.lt.s32.totalorder %s1726_s15, %s1719_s7 }
  0x3b   : > { %p1723_p0 = pneg %p1722_p12  ;;  %p1729_p7 = por %p1728_p3, %p1727_p2 }
  0x3d   : > { %p1730_p5 = pnand %p1729_p7, %p1723_p0 }
  0x3f   : > { %1733 = shalt.err (!%p1730_p5)
}
  0x40   : > { %s1779_s16 = smov 64   ;;  %s1780_s18 = smov 4  }
  0x41   : > { %1574 = dma.hbm_to_vmem [thread:$0]  (!%p1864_p8), %s1906_s25, 8192, %s1908_s17, %s216_s8, %s1779_s16, %s1779_s16, %s1780_s18  }
  0x42   : > { %238 = sbr.rel (%p1898_p1) target bundleno = 534 (0x216), region = 40  ;;  %s240_s24 = sand.u32 (!%p1898_p1), 1, %s1764_s19  }
  0x43   : > { %s1383_s10 = sshll.u32 (!%p1898_p1), %s240_s24, 7  ;;  %s241_s21 = scalar_lea.sflag (!%p1898_p1), [#allocation3], %s240_s24 }
  0x44   : > { %s1938_s12 = scalar_lea.vmem (!%p1898_p1), [#allocation2], %s1383_s10  ;;  %p2108_p7 = scmp.ne.s32.totalorder (!%p1898_p1), %s2105_s27, 0 }
  0x47   : > { %1751 = dma.done.wait (%p2108_p7), %s241_s21, 2048  }
  0x48   : > { %1753 = vsyncadd (%p2108_p7), %s241_s21, 4294965248  ;;  %s1384_s29 = sshll.u32 %s240_s24, 9  ;;  %s250_s11 = scalar_lea.sflag [#allocation5], %s240_s24 }
  0x49   : > { %s1944_s28 = scalar_lea.vmem [#allocation4], %s1384_s29 }
  0x4a   : > { %1755 = dma.done.wait (%p2108_p7), %s250_s11, 8192  }
  0x4b   : > { %1757 = vsyncadd (%p2108_p7), %s250_s11, 4294959104  ;;  %s1385_s14 = sshll.u32 %s1831_s22, 3  ;;  %p1386_p10 = scmp.ne.s32.totalorder %s1831_s22, 0 }
  0x4c   : > { %p286_p8 = scmp.lt.s32.totalorder %s1385_s14, 15 }
  0x4d   : > { %295 = sbr.rel (%p1386_p10) target bundleno = 84 (0x54), region = 52 }
  0x4e   : > { %s2114_s14 = smov (!%p286_p8, %s1385_s14), 15 }
  0x4f   : > { %s288_s8 = scalar_lea.vmem %s2100_s2, %s2114_s14 }
  0x52   : > { %v1387_v0 = vld [vmem:[%s2102_s4] ss:$0 sm:$0xff] }
  0x53   : > { %303 = vst [vmem:[%s2103_s5] sm:$0xff] %v1387_v0 }
  0x54 PF: > { %v313_v1 = vld [vmem:[%s1938_s12 + $0x40] sm:$0xff]  ;;  %v314_v3 = vld [vmem:[%s1938_s12 + $0x48] sm:$0xff]  ;;  %v1781_v9 = vmov 0   ;;  %v315_v16 = vld [vmem:[%s1938_s12 + $0x50] sm:$0xff]  ;;  %vm443_vm0 = vcmask 261120  }
  0x55   : > { %v317_v2 = vld [vmem:[%s1938_s12 + $0x60] sm:$0xff]  ;;  %v318_v5 = vld [vmem:[%s1938_s12 + $0x68] sm:$0xff]  ;;  %479 = vmatprep.mubr.bf16.mxu0 %v1781_v9  ;;  %520 = vmatprep.mubr.bf16.mxu1 %v1781_v9  ;;  %v319_v17 = vld [vmem:[%s1938_s12 + $0x70] sm:$0xff] }
  0x56   : > { %v1397_v4 = vcombine.high %v313_v1, %v317_v2  ;;  %v1396_v6 = vcombine.low %v313_v1, %v317_v2  ;;  %v305_v7 = vld [vmem:[%s1938_s12] sm:$0xff]  ;;  %v1399_v10 = vcombine.high %v314_v3, %v318_v5  ;;  %v1398_v11 = vcombine.low %v314_v3, %v318_v5  ;;  %v306_v13 = vld [vmem:[%s1938_s12 + $0x8] sm:$0xff]  ;;  %v316_v18 = vld [vmem:[%s1938_s12 + $0x58] sm:$0xff] }
  0x57   : > { %v309_v8 = vld [vmem:[%s1938_s12 + $0x20] sm:$0xff]  ;;  %v310_v14 = vld [vmem:[%s1938_s12 + $0x28] sm:$0xff]  ;;  %v320_v20 = vld [vmem:[%s1938_s12 + $0x78] sm:$0xff]  ;;  %v1401_v22 = vcombine.high %v315_v16, %v319_v17  ;;  %v1400_v29 = vcombine.low %v315_v16, %v319_v17  ;;  %v323_v5 = vlaneseq }
  0x58   : > { %v1389_v12 = vcombine.high %v305_v7, %v309_v8  ;;  %459 = vmatprep.subr.bf16.mxu0 %v1397_v4  ;;  %v1391_v15 = vcombine.high %v306_v13, %v310_v14  ;;  %500 = vmatprep.subr.bf16.mxu1 %v1399_v10  ;;  %v1388_v19 = vcombine.low %v305_v7, %v309_v8  ;;  %v307_v23 = vld [vmem:[%s1938_s12 + $0x10] sm:$0xff]  ;;  %v308_v26 = vld [vmem:[%s1938_s12 + $0x18] sm:$0xff]  ;;  %v304_v28 = vld [vmem:[%s2098_s0] sm:$0xf] }
  0x59   : > { %460 = vmatpush1.bf16.msra.mxu0 %v1396_v6  ;;  %501 = vmatpush1.bf16.msra.mxu1 %v1398_v11  ;;  %v1390_v21 = vcombine.low %v306_v13, %v310_v14  ;;  %v311_v24 = vld [vmem:[%s1938_s12 + $0x30] sm:$0xff]  ;;  %v1403_v25 = vcombine.high %v316_v18, %v320_v20  ;;  %v312_v27 = vld [vmem:[%s1938_s12 + $0x38] sm:$0xff]  ;;  %v1402_v30 = vcombine.low %v316_v18, %v320_v20  ;;  %v1622_v43 = vld [vmem:[%s1944_s28 + $0x68] sm:$0xff]   ;;  %v2021_v6 = vshrl.u32 %v323_v5, 7 }
  0x5a   : > { %461 = vmatprep.subr.bf16.mxu0 %v1389_v12  ;;  %502 = vmatprep.subr.bf16.mxu1 %v1391_v15  ;;  %v1393_v31 = vcombine.high %v307_v23, %v311_v24  ;;  %v1395_v32 = vcombine.high %v308_v26, %v312_v27  ;;  %v1392_v33 = vcombine.low %v307_v23, %v311_v24  ;;  %v1614_v35 = vld [vmem:[%s1944_s28 + $0x78] sm:$0xff]   ;;  %v1618_v39 = vld [vmem:[%s1944_s28 + $0x70] sm:$0xff]   ;;  %v1623_v44 = vld [vmem:[%s1944_s28 + $0xe8] sm:$0xff]  }
  0x5b   : > { %v1394_v34 = vcombine.low %v308_v26, %v312_v27  ;;  %v1615_v36 = vld [vmem:[%s1944_s28 + $0xf8] sm:$0xff]   ;;  %v1619_v40 = vld [vmem:[%s1944_s28 + $0xf0] sm:$0xff]   ;;  %v1624_v45 = vld [vmem:[%s1944_s28 + $0x28] sm:$0xff]   ;;  %v325_v7 = vsub.s32 0, %v2021_v6  ;;  %v329_v10 = vsub.s32 1, %v2021_v6  ;;  %v337_v11 = vsub.s32 3, %v2021_v6 }
  0x5c   : > { %v1616_v37 = vld [vmem:[%s1944_s28 + $0x38] sm:$0xff]   ;;  %v1620_v41 = vld [vmem:[%s1944_s28 + $0x30] sm:$0xff]   ;;  %v1625_v46 = vld [vmem:[%s1944_s28 + $0xa8] sm:$0xff]   ;;  %v345_v23 = vsub.s32 5, %v2021_v6 }
  0x5d   : > { %462 = vmatpush1.bf16.msra.mxu0 %v1388_v19  ;;  %503 = vmatpush1.bf16.msra.mxu1 %v1390_v21  ;;  %v1617_v38 = vld [vmem:[%s1944_s28 + $0xb8] sm:$0xff]   ;;  %v1621_v42 = vld [vmem:[%s1944_s28 + $0xb0] sm:$0xff]   ;;  %v1626_v47 = vld [vmem:[%s1944_s28 + $0x60] sm:$0xff]  }
  0x5e   : > { %541 = vmatprep.subr.bf16.mxu0 %v1401_v22  ;;  %582 = vmatprep.subr.bf16.mxu1 %v1403_v25  ;;  %v1627_v48 = vld [vmem:[%s1944_s28 + $0xe0] sm:$0xff]   ;;  %v1630_v51 = vld [vmem:[%s1944_s28 + $0x58] sm:$0xff]   ;;  %v1634_v55 = vld [vmem:[%s1944_s28 + $0x50] sm:$0xff]  }
  0x5f   : > { %v1628_v49 = vld [vmem:[%s1944_s28 + $0x20] sm:$0xff]   ;;  %v1631_v52 = vld [vmem:[%s1944_s28 + $0xd8] sm:$0xff]   ;;  %v1635_v56 = vld [vmem:[%s1944_s28 + $0xd0] sm:$0xff]  }
  0x60   : > { %1404 = vmatmul.mubr.msk.bf16.vlgmr.msra.gmra.mxu0 %vm443_vm0, %v304_v28  ;;  %1405 = vmatmul.mubr.msk.bf16.vlgmr.msra.gmra.mxu1 %vm443_vm0, %v304_v28  ;;  %v1629_v50 = vld [vmem:[%s1944_s28 + $0xa0] sm:$0xff]   ;;  %v1632_v53 = vld [vmem:[%s1944_s28 + $0x18] sm:$0xff]   ;;  %v1636_v57 = vld [vmem:[%s1944_s28 + $0x10] sm:$0xff]  }
  0x61   : > { %542 = vmatpush1.bf16.msra.mxu0 %v1400_v29  ;;  %583 = vmatpush1.bf16.msra.mxu1 %v1402_v30  ;;  %v1633_v54 = vld [vmem:[%s1944_s28 + $0x98] sm:$0xff]   ;;  %v1637_v58 = vld [vmem:[%s1944_s28 + $0x90] sm:$0xff]   ;;  %v1638_v59 = vld [vmem:[%s1944_s28 + $0x48] sm:$0xff]  }
  0x62   : > { %543 = vmatprep.subr.bf16.mxu0 %v1393_v31  ;;  %584 = vmatprep.subr.bf16.mxu1 %v1395_v32  ;;  %v1639_v60 = vld [vmem:[%s1944_s28 + $0xc8] sm:$0xff]   ;;  %v1642_v63 = vld [vmem:[%s1944_s28 + $0x40] sm:$0xff]   ;;  %v1646_v3 = vld [vmem:[%s1944_s28 + $0x178] sm:$0xff]  }
  0x63   : > { %561 = vmatprep.mubr.bf16.mxu0 %v1781_v9  ;;  %602 = vmatprep.mubr.bf16.mxu1 %v1781_v9  ;;  %v1640_v61 = vld [vmem:[%s1944_s28 + $0x8] sm:$0xff]   ;;  %v1643_v0 = vld [vmem:[%s1944_s28 + $0xc0] sm:$0xff]   ;;  %v1647_v4 = vld [vmem:[%s1944_s28 + $0x1f8] sm:$0xff]   ;;  %v333_v9 = vsub.s32 2, %v2021_v6 }
  0x64   : > { %v1641_v62 = vld [vmem:[%s1944_s28 + $0x88] sm:$0xff]   ;;  %v1644_v1 = vld [vmem:[%s1944_s28] sm:$0xff]   ;;  %v1663_v5 = vld [vmem:[%s1944_s28 + $0x1d8] sm:$0xff]  }
  0x65   : > { %544 = vmatpush1.bf16.msra.mxu0 %v1392_v33  ;;  %585 = vmatpush1.bf16.msra.mxu1 %v1394_v34  ;;  %v1645_v2 = vld [vmem:[%s1944_s28 + $0x80] sm:$0xff]  }
  0x66   : > { %1476 = vmatprep.subr.bf16.mxu0 %v1614_v35  ;;  %1498 = vmatprep.subr.bf16.mxu1 %v1615_v36  ;;  %v2029_v8 = vld [vmem:[%s288_s8] sm:$0xff]  ;;  %v1648_v36 = vld [vmem:[%s1944_s28 + $0x138] sm:$0xff]  }
  0x67   : > { %v326_v12 = vrot.slane %v2029_v8, %v325_v7  ;;  %v334_v13 = vrot.slane %v2029_v8, %v333_v9  ;;  %v330_v14 = vrot.slane %v2029_v8, %v329_v10  ;;  %v338_v16 = vrot.slane %v2029_v8, %v337_v11  ;;  %v1664_v7 = vld [vmem:[%s1944_s28 + $0x118] sm:$0xff]  }
  0x68   : > { %1406 = vmatmul.mubr.msk.bf16.vlgmr.msra.gmra.mxu0 %vm443_vm0, %v304_v28  ;;  %1407 = vmatmul.mubr.msk.bf16.vlgmr.msra.gmra.mxu1 %vm443_vm0, %v304_v28  ;;  %v353_v28 = vsub.s32 7, %v2021_v6  ;;  %v349_v9 = vsub.s32 6, %v2021_v6  ;;  %v341_v10 = vsub.s32 4, %v2021_v6  ;;  %v1665_v11 = vld [vmem:[%s1944_s28 + $0x198] sm:$0xff]   ;;  %v1670_v6 = vld [vmem:[%s1944_s28 + $0x148] sm:$0xff]  }
  0x69   : > { %1477 = vmatpush3.bf16.msra.mxu0 %v1616_v37  ;;  %1499 = vmatpush3.bf16.msra.mxu1 %v1617_v38  ;;  %v346_v37 = vrot.slane %v2029_v8, %v345_v23  ;;  %v1674_v23 = vld [vmem:[%s1944_s28 + $0x140] sm:$0xff]  }
  0x6a   : > { %1478 = vmatprep.subr.bf16.mxu0 %v1618_v39  ;;  %1500 = vmatprep.subr.bf16.mxu1 %v1619_v40  ;;  %v1649_v40 = vld [vmem:[%s1944_s28 + $0x1b8] sm:$0xff]  }
  0x6d   : > { %1479 = vmatpush3.bf16.msra.mxu0 %v1620_v41  ;;  %1501 = vmatpush3.bf16.msra.mxu1 %v1621_v42  ;;  %v1650_v41 = vld [vmem:[%s1944_s28 + $0x170] sm:$0xff]  }
  0x6e   : > { %1480 = vmatprep.subr.bf16.mxu0 %v1622_v43  ;;  %1502 = vmatprep.subr.bf16.mxu1 %v1623_v44  ;;  %v354_v43 = vrot.slane %v2029_v8, %v353_v28  ;;  %v1651_v44 = vld [vmem:[%s1944_s28 + $0x1f0] sm:$0xff]  }
  0x71   : > { %1481 = vmatpush3.bf16.msra.mxu0 %v1624_v45  ;;  %1503 = vmatpush3.bf16.msra.mxu1 %v1625_v46 }
  0x72   : > { %1482 = vmatprep.subr.bf16.mxu0 %v1626_v47  ;;  %1504 = vmatprep.subr.bf16.mxu1 %v1627_v48  ;;  %v1652_v47 = vld [vmem:[%s1944_s28 + $0x130] sm:$0xff]  }
  0x75   : > { %1483 = vmatpush3.bf16.msra.mxu0 %v1628_v49  ;;  %1505 = vmatpush3.bf16.msra.mxu1 %v1629_v50  ;;  %v1653_v50 = vld [vmem:[%s1944_s28 + $0x1b0] sm:$0xff]  }
  0x76   : > { %1484 = vmatprep.subr.bf16.mxu0 %v1630_v51  ;;  %1506 = vmatprep.subr.bf16.mxu1 %v1631_v52  ;;  %v1654_v51 = vld [vmem:[%s1944_s28 + $0x168] sm:$0xff]  }
  0x79   : > { %1485 = vmatpush3.bf16.msra.mxu0 %v1632_v53  ;;  %1507 = vmatpush3.bf16.msra.mxu1 %v1633_v54  ;;  %v1655_v54 = vld [vmem:[%s1944_s28 + $0x1e8] sm:$0xff]  }
  0x7a   : > { %1486 = vmatprep.subr.bf16.mxu0 %v1634_v55  ;;  %1508 = vmatprep.subr.bf16.mxu1 %v1635_v56 }
  0x7d   : > { %1487 = vmatpush3.bf16.msra.mxu0 %v1636_v57  ;;  %1509 = vmatpush3.bf16.msra.mxu1 %v1637_v58 }
  0x7e   : > { %1488 = vmatprep.subr.bf16.mxu0 %v1638_v59  ;;  %1510 = vmatprep.subr.bf16.mxu1 %v1639_v60  ;;  %v1656_v59 = vld [vmem:[%s1944_s28 + $0x128] sm:$0xff]  }
  0x81   : > { %1489 = vmatpush3.bf16.msra.mxu0 %v1640_v61  ;;  %1511 = vmatpush3.bf16.msra.mxu1 %v1641_v62  ;;  %v1657_v62 = vld [vmem:[%s1944_s28 + $0x1a8] sm:$0xff]  }
  0x82   : > { %1490 = vmatprep.subr.bf16.mxu0 %v1642_v63  ;;  %1512 = vmatprep.subr.bf16.mxu1 %v1643_v0  ;;  %v1658_v63 = vld [vmem:[%s1944_s28 + $0x160] sm:$0xff]  }
  0x85   : > { %1491 = vmatpush3.bf16.msra.mxu0 %v1644_v1  ;;  %1513 = vmatpush3.bf16.msra.mxu1 %v1645_v2  ;;  %v1659_v1 = vld [vmem:[%s1944_s28 + $0x1e0] sm:$0xff]  }
  0x86   : > { %1520 = vmatprep.subr.bf16.mxu0 %v1646_v3  ;;  %1542 = vmatprep.subr.bf16.mxu1 %v1647_v4  ;;  %v1660_v2 = vld [vmem:[%s1944_s28 + $0x120] sm:$0xff]   ;;  %v1662_v4 = vld [vmem:[%s1944_s28 + $0x158] sm:$0xff]  }
  0x87   : > { %v1661_v3 = vld [vmem:[%s1944_s28 + $0x1a0] sm:$0xff]  }
 0x120   : > { %v481_v15 = vpop.f32.mrf.mxu0  ;;  %v522_v18 = vpop.f32.mrf.mxu1 }
 0x121   : > { %v482_v17 = vadd.f32 %v481_v15, %v326_v12  ;;  %v523_v19 = vadd.f32 %v522_v18, %v334_v13  ;;  %v1666_v12 = vld [vmem:[%s1944_s28 + $0x150] sm:$0xff]   ;;  %v1671_v18 = vld [vmem:[%s1944_s28 + $0x1c8] sm:$0xff]  }
 0x122   : > { %v483_v20 = vpop.f32.mrf.mxu0  ;;  %v524_v22 = vpop.f32.mrf.mxu1  ;;  %v1667_v13 = vld [vmem:[%s1944_s28 + $0x1d0] sm:$0xff]  }
 0x123   : > { %v484_v21 = vadd.f32 %v483_v20, %v330_v14  ;;  %v611_v24 = vmax.f32 %v482_v17, 0.0  ;;  %v613_v25 = vmax.f32 %v523_v19, 0.0  ;;  %v525_v26 = vadd.f32 %v524_v22, %v338_v16  ;;  %v1668_v15 = vld [vmem:[%s1944_s28 + $0x110] sm:$0xff]   ;;  %v1672_v20 = vld [vmem:[%s1944_s28 + $0x108] sm:$0xff]  }
 0x124   : > { %v485_v27 = vpop.f32.mrf.mxu0  ;;  %v526_v30 = vpop.f32.mrf.mxu1  ;;  %v350_v14 = vrot.slane %v2029_v8, %v349_v9  ;;  %v342_v16 = vrot.slane %v2029_v8, %v341_v10  ;;  %v1669_v17 = vld [vmem:[%s1944_s28 + $0x190] sm:$0xff]   ;;  %v1673_v22 = vld [vmem:[%s1944_s28 + $0x188] sm:$0xff]   ;;  %v1675_v8 = vld [vmem:[%s1944_s28 + $0x1c0] sm:$0xff]  }
 0x125   : > { %v612_v29 = vmax.f32 %v484_v21, 0.0  ;;  %v614_v31 = vmax.f32 %v525_v26, 0.0  ;;  %v622_v33 = vpack.c.bf16 %v613_v25, %v613_v25  ;;  %v620_v38 = vpack.c.bf16 %v611_v24, %v611_v24  ;;  %v1676_v25 = vld [vmem:[%s1944_s28 + $0x100] sm:$0xff]  }
 0x126   : > { %v486_v32 = vpop.f32.mrf.mxu0  ;;  %v527_v35 = vpop.f32.mrf.mxu1  ;;  %v1677_v27 = vld [vmem:[%s1944_s28 + $0x180] sm:$0xff]  }
 0x127   : > { %v621_v34 = vpack.c.bf16 %v612_v29, %v612_v29  ;;  %v623_v39 = vpack.c.bf16 %v614_v31, %v614_v31 }
 0x128   : > { %v2044_v42 = vpop.f32.mrf.mxu0  ;;  %v604_v45 = vpop.f32.mrf.mxu1 }
 0x129   : > { %1172 = vmatprep.mubr.bf16.mxu0 %v621_v34  ;;  %1212 = vmatprep.mubr.bf16.mxu1 %v623_v39  ;;  %v605_v19 = vadd.f32 %v604_v45, %v350_v14  ;;  %v564_v21 = vadd.f32 %v2044_v42, %v342_v16 }
 0x12a   : > { %1173 = vmatmul.mubr.bf16.vlgmr.msra.gmra.mxu0 %v620_v38  ;;  %v565_v46 = vpop.f32.mrf.mxu0  ;;  %1213 = vmatmul.mubr.bf16.vlgmr.msra.gmra.mxu1 %v622_v33  ;;  %v606_v49 = vpop.f32.mrf.mxu1 }
 0x12b   : > { %1521 = vmatpush3.bf16.msra.mxu0 %v1648_v36  ;;  %v566_v48 = vadd.f32 %v565_v46, %v346_v37  ;;  %1543 = vmatpush3.bf16.msra.mxu1 %v1649_v40  ;;  %v607_v53 = vadd.f32 %v606_v49, %v354_v43  ;;  %v617_v24 = vmax.f32 %v605_v19, 0.0  ;;  %v615_v26 = vmax.f32 %v564_v21, 0.0 }
 0x12c   : > { %1522 = vmatprep.subr.bf16.mxu0 %v1650_v41  ;;  %v567_v52 = vpop.f32.mrf.mxu0  ;;  %1544 = vmatprep.subr.bf16.mxu1 %v1651_v44  ;;  %v608_v56 = vpop.f32.mrf.mxu1 }
 0x12d   : > { %v616_v55 = vmax.f32 %v566_v48, 0.0  ;;  %v618_v57 = vmax.f32 %v607_v53, 0.0  ;;  %v626_v28 = vpack.c.bf16 %v617_v24, %v617_v24  ;;  %v624_v29 = vpack.c.bf16 %v615_v26, %v615_v26 }
 0x12e   : > { %v568_v58 = vpop.f32.mrf.mxu0  ;;  %v609_v61 = vpop.f32.mrf.mxu1 }
 0x12f   : > { %1523 = vmatpush3.bf16.msra.mxu0 %v1652_v47  ;;  %v625_v60 = vpack.c.bf16 %v616_v55, %v616_v55  ;;  %1545 = vmatpush3.bf16.msra.mxu1 %v1653_v50  ;;  %v627_v0 = vpack.c.bf16 %v618_v57, %v618_v57  ;;  %v619_v50 = vld [vmem:[%s2103_s5] sm:$0xff] }
 0x130   : > { %1524 = vmatprep.subr.bf16.mxu0 %v1654_v51  ;;  %1546 = vmatprep.subr.bf16.mxu1 %v1655_v54 }
 0x131   : > { %1252 = vmatprep.mubr.bf16.mxu0 %v625_v60  ;;  %1292 = vmatprep.mubr.bf16.mxu1 %v627_v0 }
 0x133   : > { %1525 = vmatpush3.bf16.msra.mxu0 %v1656_v59  ;;  %1547 = vmatpush3.bf16.msra.mxu1 %v1657_v62 }
 0x134   : > { %1526 = vmatprep.subr.bf16.mxu0 %v1658_v63  ;;  %1548 = vmatprep.subr.bf16.mxu1 %v1659_v1 }
 0x137   : > { %1527 = vmatpush3.bf16.msra.mxu0 %v1660_v2  ;;  %1549 = vmatpush3.bf16.msra.mxu1 %v1661_v3 }
 0x138   : > { %1528 = vmatprep.subr.bf16.mxu0 %v1662_v4  ;;  %1550 = vmatprep.subr.bf16.mxu1 %v1663_v5 }
 0x13b   : > { %1529 = vmatpush3.bf16.msra.mxu0 %v1664_v7  ;;  %1551 = vmatpush3.bf16.msra.mxu1 %v1665_v11 }
 0x13c   : > { %1530 = vmatprep.subr.bf16.mxu0 %v1666_v12  ;;  %1552 = vmatprep.subr.bf16.mxu1 %v1667_v13 }
 0x13f   : > { %1531 = vmatpush3.bf16.msra.mxu0 %v1668_v15  ;;  %1553 = vmatpush3.bf16.msra.mxu1 %v1669_v17 }
 0x140   : > { %1532 = vmatprep.subr.bf16.mxu0 %v1670_v6  ;;  %1554 = vmatprep.subr.bf16.mxu1 %v1671_v18 }
 0x143   : > { %1533 = vmatpush3.bf16.msra.mxu0 %v1672_v20  ;;  %1555 = vmatpush3.bf16.msra.mxu1 %v1673_v22 }
 0x144   : > { %1534 = vmatprep.subr.bf16.mxu0 %v1674_v23  ;;  %1556 = vmatprep.subr.bf16.mxu1 %v1675_v8 }
 0x147   : > { %1535 = vmatpush3.bf16.msra.mxu0 %v1676_v25  ;;  %1557 = vmatpush3.bf16.msra.mxu1 %v1677_v27 }
 0x14a   : > { %1253 = vmatmul.mubr.bf16.vlgmr.msra.gmra.mxu0 %v624_v29  ;;  %1293 = vmatmul.mubr.bf16.vlgmr.msra.gmra.mxu1 %v626_v28 }
 0x1ea   : > { %v1492_v30 = vpop.f32.mrf.mxu0  ;;  %v1514_v31 = vpop.f32.mrf.mxu1 }
 0x1ec   : > { %v1493_v32 = vpop.f32.mrf.mxu0  ;;  %v1515_v33 = vpop.f32.mrf.mxu1 }
 0x1ed   : > { %v1494_v38 = vadd.f32 %v1493_v32, %v1492_v30  ;;  %v1516_v39 = vadd.f32 %v1515_v33, %v1514_v31 }
 0x1ee   : > { %v1495_v34 = vpop.f32.mrf.mxu0  ;;  %v1517_v35 = vpop.f32.mrf.mxu1 }
 0x1ef   : > { %v1215_v43 = vadd.f32 %v1516_v39, %v1494_v38 }
 0x1f0   : > { %v1496_v36 = vpop.f32.mrf.mxu0  ;;  %v1518_v37 = vpop.f32.mrf.mxu1 }
 0x20a   : > { %v1536_v40 = vpop.f32.mrf.mxu0  ;;  %v1558_v41 = vpop.f32.mrf.mxu1 }
 0x20c   : > { %v1537_v42 = vpop.f32.mrf.mxu0  ;;  %v1559_v45 = vpop.f32.mrf.mxu1 }
 0x20d   : > { %v1538_v44 = vadd.f32 %v1537_v42, %v1536_v40  ;;  %v1560_v48 = vadd.f32 %v1559_v45, %v1558_v41 }
 0x20e   : > { %v1539_v46 = vpop.f32.mrf.mxu0  ;;  %v1561_v49 = vpop.f32.mrf.mxu1 }
 0x20f   : > { %v1255_v47 = vadd.f32 %v1538_v44, %v1215_v43 }
 0x210   : > { %v1540_v51 = vpop.f32.mrf.mxu0  ;;  %v1562_v53 = vpop.f32.mrf.mxu1 }
 0x211   : > { %v1295_v52 = vadd.f32 %v1560_v48, %v1255_v47 }
 0x213   : > { %v1300_v54 = vadd.f32 %v1295_v52, %v619_v50 }
 0x215   : > { %1301 = vst [vmem:[%s2103_s5] sm:$0xff] %v1300_v54 }
 0x216 PF: > { %p18_p1 = scmp.ge.s32.totalorder %s1834_s23, 4   ;;  %s2109_s18 = smov %s1764_s19 }
 0x217   : > { %s2110_s19 = smov %s1768_s20  ;;  %s2111_s20 = smov %s1844_s26 }
 0x218   : > { %s2112_s21 = smov %s1834_s23  ;;  %20 = sbr.rel (!%p18_p1) target bundleno = 5 (0x5), region = 96 }
 0x21d   :  { %1313 = vsyncpa [#allocation3], 1 }
 0x21e   :  { %1315 = vsyncpa [#allocation3 + $0x1], 1 }
 0x21f   :  { %1316 = vsyncpa [#allocation5], 1 }
 0x220   :  { %1318 = vsyncpa [#allocation5 + $0x1], 1 }

</bundles_post_ra>
